<compile_context>
chip_gen: v7x
topology: tpu7x:2x2x1
jax: 0.10.0
libtpu: 0.0.40
codegen_flags: <defaults>
</compile_context>

<pallas_src>
import functools

import jax
import jax.numpy as jnp
from jax.experimental import pallas as pl
from jax.experimental.pallas import tpu as pltpu


# ----------------------------------------------------------------------------
# Kernel: fused 3-layer MLP on one batch tile.
#   x_ref:    [TB, S]   float32 (cast to compute dtype in-kernel)
#   w*_ref:   [in, out] compute dtype (bf16 by default)
#   b*_ref:   [1, out]  float32
#   mean_ref: [TB, A]   float32
# ----------------------------------------------------------------------------
def gaussian_policy_kernel(x_ref, w1_ref, b1_ref, w2_ref, b2_ref, w3_ref, b3_ref,
                           mean_ref):
    cd = w1_ref.dtype                     # compute dtype for MXU inputs

    x = x_ref[...].astype(cd)             # in-kernel cast (hidden under DMA)
    h1 = jnp.dot(x, w1_ref[...], preferred_element_type=jnp.float32) + b1_ref[...]
    h1 = jnp.maximum(h1, 0.0)             # ReLU (f32, VPU)

    h2 = jnp.dot(h1.astype(cd), w2_ref[...],
                 preferred_element_type=jnp.float32) + b2_ref[...]
    h2 = jnp.maximum(h2, 0.0)             # ReLU (f32, VPU)

    out = jnp.dot(h2.astype(cd), w3_ref[...],
                  preferred_element_type=jnp.float32) + b3_ref[...]
    mean_ref[...] = jnp.tanh(out)         # Tanh (f32, EUP)


# ----------------------------------------------------------------------------
# One-time parameter prep (hoisted out of the per-call forward).
# ----------------------------------------------------------------------------
def prepare_params(params, compute_dtype=jnp.bfloat16):
    w1, b1, w2, b2, w3, b3 = params
    return (
        jnp.asarray(w1, compute_dtype), jnp.asarray(b1, jnp.float32).reshape(1, -1),
        jnp.asarray(w2, compute_dtype), jnp.asarray(b2, jnp.float32).reshape(1, -1),
        jnp.asarray(w3, compute_dtype), jnp.asarray(b3, jnp.float32).reshape(1, -1),
    )


# ----------------------------------------------------------------------------
# Wrapper: tiling + pallas_call.  No padding, no casts, no output slicing.
# ----------------------------------------------------------------------------
@functools.partial(jax.jit, static_argnames=("tile_b", "core_parallel"))
def gaussian_policy_forward(obs, prepared_params, *, tile_b=4096,
                            core_parallel=False):
    """obs: [B, state_dim] float32 -> mean: [B, act_dim] float32."""
    w1, b1, w2, b2, w3, b3 = prepared_params
    B, S = obs.shape
    A = w3.shape[1]

    # Batch tile: multiple of 8 sublanes (f32 blocks), never bigger than needed.
    tb = min(tile_b, pl.cdiv(B, 8) * 8)
    tb = max(8, (tb // 8) * 8)
    grid = (pl.cdiv(B, tb),)              # partial last tile handled by masking

    # Weights/biases: one full-array block, constant index_map -> VMEM-resident.
    def const_spec(a):
        return pl.BlockSpec(a.shape, lambda i: (0,) * a.ndim)

    # CORE_PARALLEL shards the batch axis across v7x's 2 TensorCores; plain
    # "parallel" is the portable default (near-identical codegen on v5e/v6e).
    sem = (pltpu.CORE_PARALLEL,) if core_parallel else ("parallel",)

    return pl.pallas_call(
        gaussian_policy_kernel,
        out_shape=jax.ShapeDtypeStruct((B, A), jnp.float32),
        grid=grid,
        in_specs=[
            pl.BlockSpec((tb, S), lambda i: (i, 0)),   # obs streams per tile (f32)
            const_spec(w1), const_spec(b1),
            const_spec(w2), const_spec(b2),
            const_spec(w3), const_spec(b3),
        ],
        out_specs=pl.BlockSpec((tb, A), lambda i: (i, 0)),  # lane-masked vst: OK, DMA-bound
        compiler_params=pltpu.CompilerParams(
            dimension_semantics=sem,
            vmem_limit_bytes=32 * 1024 * 1024,
        ),
    )(obs, w1, b1, w2, b2, w3, b3)


# ----------------------------------------------------------------------------
# Deterministic parameters (orthogonal weights, zero biases), mirroring
# PolicyMLP([state_dim, hidden, hidden, act_dim]) with Tanh output activation.
# ----------------------------------------------------------------------------
def init_params(key, state_dim, hidden_dim, act_dim):
    ortho = jax.nn.initializers.orthogonal(scale=1.0)
    k1, k2, k3 = jax.random.split(key, 3)
    w1 = ortho(k1, (state_dim, hidden_dim), jnp.float32)
    b1 = jnp.zeros((hidden_dim,), jnp.float32)
    w2 = ortho(k2, (hidden_dim, hidden_dim), jnp.float32)
    b2 = jnp.zeros((hidden_dim,), jnp.float32)
    w3 = ortho(k3, (hidden_dim, act_dim), jnp.float32)
    b3 = jnp.zeros((act_dim,), jnp.float32)
    # log_std is a module parameter but is not used in forward() (only in
    # get_dist); kept here only for parameter-set completeness.
    log_std = jnp.zeros((act_dim,), jnp.float32)
    return (w1, b1, w2, b2, w3, b3), log_std


def reference_forward(obs, params, compute_dtype=jnp.bfloat16):
    """Pure-JAX reference with the same dtype semantics as the kernel."""
    w1, b1, w2, b2, w3, b3 = params
    cd = compute_dtype
    h = jnp.maximum(
        jnp.dot(obs.astype(cd), w1.astype(cd),
                preferred_element_type=jnp.float32) + b1.reshape(1, -1), 0.0)
    h = jnp.maximum(
        jnp.dot(h.astype(cd), w2.astype(cd),
                preferred_element_type=jnp.float32) + b2.reshape(1, -1), 0.0)
    return jnp.tanh(
        jnp.dot(h.astype(cd), w3.astype(cd),
                preferred_element_type=jnp.float32) + b3.reshape(1, -1))


if __name__ == "__main__":
    key = jax.random.PRNGKey(0)
    k_obs, k_par = jax.random.split(key)

    # Small, module-consistent shapes; batch intentionally NOT a tile multiple
    # so the masked partial-tile path is exercised.
    batch, state_dim, hidden_dim, act_dim = 40, 16, 32, 4
    obs = jax.random.normal(k_obs, (batch, state_dim), dtype=jnp.float32)

    params, _log_std = init_params(k_par, state_dim, hidden_dim, act_dim)
    prepped = prepare_params(params)           # one-time cast, outside forward

    ref = reference_forward(obs, params)

    # Multi-step grid with a partial final tile (40 rows, tile 16 -> 3 steps).
    mean_small = jax.block_until_ready(
        gaussian_policy_forward(obs, prepped, tile_b=16))
    # Default fat tile (single grid step covering the whole batch).
    mean_big = jax.block_until_ready(
        gaussian_policy_forward(obs, prepped))

    for mean in (mean_small, mean_big):
        assert mean.shape == (batch, act_dim)
        assert bool(jnp.allclose(mean, ref, atol=1e-3, rtol=1e-3)), (
            float(jnp.max(jnp.abs(mean - ref))))

    print("KERNEL_OK")
</pallas_src>

<mosaic_0001>
module attributes {stable_mosaic.version = 11 : i64} {
  func.func @gaussian_policy_kernel(%arg0: i32, %arg1: memref<16x16xf32, #tpu.memory_space<vmem>>, %arg2: memref<16x32xbf16, #tpu.memory_space<vmem>>, %arg3: memref<1x32xf32, #tpu.memory_space<vmem>>, %arg4: memref<32x32xbf16, #tpu.memory_space<vmem>>, %arg5: memref<1x32xf32, #tpu.memory_space<vmem>>, %arg6: memref<32x4xbf16, #tpu.memory_space<vmem>>, %arg7: memref<1x4xf32, #tpu.memory_space<vmem>>, %arg8: memref<16x4xf32, #tpu.memory_space<vmem>>) attributes {dimension_semantics = [#tpu.dimension_semantics<parallel>], iteration_bounds = array<i64: 3>, scalar_prefetch = 0 : i64, scratch_operands = 0 : i64, tpu.core_type = #tpu.core_type<tc>, window_params = [{transform_indices = @transform_0, window_bounds = array<i64: 16, 16>}, {pipeline_mode = #tpu.pipeline_mode<synchronous>, transform_indices = @transform_1, window_bounds = array<i64: 16, 32>}, {pipeline_mode = #tpu.pipeline_mode<synchronous>, transform_indices = @transform_2, window_bounds = array<i64: 1, 32>}, {pipeline_mode = #tpu.pipeline_mode<synchronous>, transform_indices = @transform_3, window_bounds = array<i64: 32, 32>}, {pipeline_mode = #tpu.pipeline_mode<synchronous>, transform_indices = @transform_4, window_bounds = array<i64: 1, 32>}, {pipeline_mode = #tpu.pipeline_mode<synchronous>, transform_indices = @transform_5, window_bounds = array<i64: 32, 4>}, {pipeline_mode = #tpu.pipeline_mode<synchronous>, transform_indices = @transform_6, window_bounds = array<i64: 1, 4>}, {transform_indices = @transform_7, window_bounds = array<i64: 16, 4>}]} {
    %c0 = arith.constant 0 : index
    %c0_0 = arith.constant 0 : index
    %0 = vector.load %arg1[%c0, %c0_0] : memref<16x16xf32, #tpu.memory_space<vmem>>, vector<16x16xf32>
    %1 = arith.truncf %0 : vector<16x16xf32> to vector<16x16xbf16>
    %c0_1 = arith.constant 0 : index
    %c0_2 = arith.constant 0 : index
    %2 = vector.load %arg2[%c0_1, %c0_2] : memref<16x32xbf16, #tpu.memory_space<vmem>>, vector<16x32xbf16>
    %cst = arith.constant dense<0.000000e+00> : vector<16x32xf32>
    %3 = tpu.matmul %1, %2, %cst {dimension_numbers = #tpu.dot_dimension_numbers<[1], [0], [0], [1], [0, 0, 1, 1], [], []>} : vector<16x16xbf16>, vector<16x32xbf16>, vector<16x32xf32> -> vector<16x32xf32>
    %c0_3 = arith.constant 0 : index
    %c0_4 = arith.constant 0 : index
    %4 = vector.load %arg3[%c0_3, %c0_4] : memref<1x32xf32, #tpu.memory_space<vmem>>, vector<1x32xf32>
    %5 = vector.broadcast %4 : vector<1x32xf32> to vector<16x32xf32>
    %6 = arith.addf %3, %5 : vector<16x32xf32>
    %cst_5 = arith.constant 0.000000e+00 : f32
    %7 = vector.broadcast %cst_5 : f32 to vector<16x32xf32>
    %8 = arith.maximumf %6, %7 : vector<16x32xf32>
    %9 = arith.truncf %8 : vector<16x32xf32> to vector<16x32xbf16>
    %c0_6 = arith.constant 0 : index
    %c0_7 = arith.constant 0 : index
    %10 = vector.load %arg4[%c0_6, %c0_7] : memref<32x32xbf16, #tpu.memory_space<vmem>>, vector<32x32xbf16>
    %cst_8 = arith.constant dense<0.000000e+00> : vector<16x32xf32>
    %11 = tpu.matmul %9, %10, %cst_8 {dimension_numbers = #tpu.dot_dimension_numbers<[1], [0], [0], [1], [0, 0, 1, 1], [], []>} : vector<16x32xbf16>, vector<32x32xbf16>, vector<16x32xf32> -> vector<16x32xf32>
    %c0_9 = arith.constant 0 : index
    %c0_10 = arith.constant 0 : index
    %12 = vector.load %arg5[%c0_9, %c0_10] : memref<1x32xf32, #tpu.memory_space<vmem>>, vector<1x32xf32>
    %13 = vector.broadcast %12 : vector<1x32xf32> to vector<16x32xf32>
    %14 = arith.addf %11, %13 : vector<16x32xf32>
    %cst_11 = arith.constant 0.000000e+00 : f32
    %15 = vector.broadcast %cst_11 : f32 to vector<16x32xf32>
    %16 = arith.maximumf %14, %15 : vector<16x32xf32>
    %17 = arith.truncf %16 : vector<16x32xf32> to vector<16x32xbf16>
    %c0_12 = arith.constant 0 : index
    %c0_13 = arith.constant 0 : index
    %18 = vector.load %arg6[%c0_12, %c0_13] : memref<32x4xbf16, #tpu.memory_space<vmem>>, vector<32x4xbf16>
    %cst_14 = arith.constant dense<0.000000e+00> : vector<16x4xf32>
    %19 = tpu.matmul %17, %18, %cst_14 {dimension_numbers = #tpu.dot_dimension_numbers<[1], [0], [0], [1], [0, 0, 1, 1], [], []>} : vector<16x32xbf16>, vector<32x4xbf16>, vector<16x4xf32> -> vector<16x4xf32>
    %c0_15 = arith.constant 0 : index
    %c0_16 = arith.constant 0 : index
    %20 = vector.load %arg7[%c0_15, %c0_16] : memref<1x4xf32, #tpu.memory_space<vmem>>, vector<1x4xf32>
    %21 = vector.broadcast %20 : vector<1x4xf32> to vector<16x4xf32>
    %22 = arith.addf %19, %21 : vector<16x4xf32>
    %23 = math.tanh %22 : vector<16x4xf32>
    %c0_17 = arith.constant 0 : index
    %c0_18 = arith.constant 0 : index
    %24 = vector.load %arg8[%c0_17, %c0_18] : memref<16x4xf32, #tpu.memory_space<vmem>>, vector<16x4xf32>
    tpu.vector_store %arg8[%c0_17, %c0_18], %23 {strides = array<i32>} : memref<16x4xf32, #tpu.memory_space<vmem>>, vector<16x4xf32>,
    return
  }
  func.func @transform_0(%arg0: i32) -> (i32, i32) {
    %c0_i32 = arith.constant 0 : i32
    %c0_i32_0 = arith.constant 0 : i32
    return %arg0, %c0_i32 : i32, i32
  }
  func.func @transform_1(%arg0: i32) -> (i32, i32) {
    %c0_i32 = arith.constant 0 : i32
    %c0_i32_0 = arith.constant 0 : i32
    %c0_i32_1 = arith.constant 0 : i32
    return %c0_i32, %c0_i32_0 : i32, i32
  }
  func.func @transform_2(%arg0: i32) -> (i32, i32) {
    %c0_i32 = arith.constant 0 : i32
    %c0_i32_0 = arith.constant 0 : i32
    %c0_i32_1 = arith.constant 0 : i32
    return %c0_i32, %c0_i32_0 : i32, i32
  }
  func.func @transform_3(%arg0: i32) -> (i32, i32) {
    %c0_i32 = arith.constant 0 : i32
    %c0_i32_0 = arith.constant 0 : i32
    %c0_i32_1 = arith.constant 0 : i32
    return %c0_i32, %c0_i32_0 : i32, i32
  }
  func.func @transform_4(%arg0: i32) -> (i32, i32) {
    %c0_i32 = arith.constant 0 : i32
    %c0_i32_0 = arith.constant 0 : i32
    %c0_i32_1 = arith.constant 0 : i32
    return %c0_i32, %c0_i32_0 : i32, i32
  }
  func.func @transform_5(%arg0: i32) -> (i32, i32) {
    %c0_i32 = arith.constant 0 : i32
    %c0_i32_0 = arith.constant 0 : i32
    %c0_i32_1 = arith.constant 0 : i32
    return %c0_i32, %c0_i32_0 : i32, i32
  }
  func.func @transform_6(%arg0: i32) -> (i32, i32) {
    %c0_i32 = arith.constant 0 : i32
    %c0_i32_0 = arith.constant 0 : i32
    %c0_i32_1 = arith.constant 0 : i32
    return %c0_i32, %c0_i32_0 : i32, i32
  }
  func.func @transform_7(%arg0: i32) -> (i32, i32) {
    %c0_i32 = arith.constant 0 : i32
    %c0_i32_0 = arith.constant 0 : i32
    return %arg0, %c0_i32 : i32, i32
  }
}

</mosaic_0001>

<bundles_post_ra>
// kernel: gaussian_policy_forward.1
= control target key start
LH: loop header
LB: loop body
LE: loop exit
PB: predicated region body
PF: predicated region fallthrough
CT: control target
= control target key end

     0   :  { %s1026_s24 = smov 0   ;;  %s1028_s25 = smov 0   ;;  %s1135_s0 = inlined_call_operand.vmem [shape: f32[40,16], index: 0, kind: input, shape index: {}]   ;;  %s1136_s1 = inlined_call_operand.vmem [shape: bf16[16,32], index: 1, kind: input, shape index: {}]   ;;  %s1137_s2 = inlined_call_operand.vmem [shape: f32[1,32], index: 2, kind: input, shape index: {}]   ;;  %s1138_s3 = inlined_call_operand.vmem [shape: bf16[32,32], index: 3, kind: input, shape index: {}]   ;;  %s1139_s4 = inlined_call_operand.vmem [shape: f32[1,32], index: 4, kind: input, shape index: {}]   ;;  %s1140_s5 = inlined_call_operand.vmem [shape: bf16[32,4], index: 5, kind: input, shape index: {}]   ;;  %s1141_s6 = inlined_call_operand.vmem [shape: f32[1,4], index: 6, kind: input, shape index: {}]   ;;  %s1142_s7 = inlined_call_operand.vmem [shape: f32[40,4], index: 7, kind: output, shape index: {}]  }
   0x1   :  { %s1030_s26 = smov 0  }
   0x2 LB: > { %s1039_s27 = sadd.s32 4294967295, %s950_s26   ;;  %s1041_s28 = sadd.s32 1, %s950_s26   ;;  %s950_s26 = sphi %s1030_s26, %s1146_s26   ;;  %s946_s25 = sphi %s1028_s25, %s1145_s25   ;;  %s942_s24 = sphi %s1026_s24, %s1144_s24  }
   0x3   : > { %s173_s29 = ssub.s32 %s950_s26, %s1041_s28  ;;  %s176_s30 = sadd.s32 1, %s946_s25 }
   0x4   : > { %p174_p0 = scmp.eq.s32.totalorder %s173_s29, 0  ;;  %p186_p1 = scmp.ne.s32.totalorder %s946_s25, %s942_s24 }
   0x5   : > { %p187_p2 = scmp.eq.s32.totalorder %s1039_s27, 2  ;;  %p732_p3 = scmp.ge.s32.totalorder %s950_s26, 1 }
   0x6   : > { %s1049_s8 = scalar_select %p174_p0, %s946_s25, %s176_s30  }
   0x7   : > { %p1051_p4 = por %p187_p2, %p186_p1  ;;  %p246_p5 = scmp.lt.s32.totalorder %s950_s26, 4 }
   0x9   : > { %p247_p6 = pnand %p732_p3, %p246_p5 }
   0xa   : > { %v887_v0 = vld [vmem:[%s1136_s1] sm:$0xff] (!%p247_p6)   ;;  %v984_v1 = vmov (!%p247_p6), 0.0   ;;  %s1059_s12 = sshll.u32 (!%p247_p6), %s1039_s27, 1  ;;  %vm985_vm0 = vmmov (!%p247_p6), 0   ;;  %vm319_vm1 = vcmask (!%p247_p6), 130048   ;;  %v889_v6 = vld [vmem:[%s1138_s3 + $0x8] sm:$0xff] (!%p247_p6)  }
   0xb   : > { %250 = sbr.rel (%p247_p6) target bundleno = 742 (0x2e6), region = 48  ;;  %775 = vmatprep.subr.bf16.mxu0 (!%p247_p6), %v984_v1  ;;  %781 = vmatprep.subr.bf16.mxu1 (!%p247_p6), %v984_v1  ;;  %p286_p7 = scmp.lt.s32.totalorder (!%p247_p6), %s1059_s12, 4  ;;  %v888_v5 = vld [vmem:[%s1138_s3] sm:$0xff] (!%p247_p6)   ;;  %vm390_vm2 = vcmask (!%p247_p6), 261120   ;;  %v891_v18 = vld [vmem:[%s1140_s5 + $0x8] sm:$0xff] (!%p247_p6)   ;;  %vm507_vm3 = vcmask (!%p247_p6), 31744  }
   0xc   : > { %776 = vmatpush3.bf16.msra.mxu0 (!%p247_p6), %v887_v0  ;;  %777 = vmatprep.mubr.msk.bf16.mxu0 (!%p247_p6), %vm985_vm0, %v984_v1  ;;  %v736_v7 = vld [vmem:[%s1137_s2] ss:$0 sm:$0xff] (!%p247_p6)  ;;  %s278_s16 = sand.u32 (!%p247_p6), 1, %s942_s24  }
   0xd   : > { %785 = vmatprep.mubr.msk.bf16.mxu1 (!%p247_p6), %vm985_vm0, %v984_v1  ;;  %789 = vmatprep.subr.bf16.mxu0 (!%p247_p6), %v984_v1  ;;  %v890_v17 = vld [vmem:[%s1140_s5] sm:$0xff] (!%p247_p6)  }
   0xe   : > { %782 = vmatpush3.bf16.msra.mxu1 (!%p247_p6), %v888_v5  ;;  %v739_v19 = vld [vmem:[%s1139_s4] ss:$0 sm:$0xff] (!%p247_p6) }
   0xf   : > { %783 = vmatprep.subr.bf16.mxu1 (!%p247_p6), %v984_v1  ;;  %v743_v29 = vld [vmem:[%s1141_s6] ss:$0 sm:$0xff] (!%p247_p6) }
  0x12   : > { %s287_s13 = scalar_select %p286_p7, %s1059_s12, 4  ;;  %784 = vmatpush3.bf16.msra.mxu1 %v889_v6 }
  0x13   : > { %s518_s19 = ssub.s32 (%p1051_p4), 5, %s1059_s12  ;;  %s764_s20 = sshll.u32 (%p1051_p4), %s1039_s27, 4 }
  0x14   : > { %s735_s14 = sshll.u32 %s287_s13, 3  ;;  %p519_p8 = scmp.lt.s32.totalorder (%p1051_p4), %s518_s19, 2 }
  0x15   : > { %s289_s17 = scalar_lea.vmem %s1135_s0, %s735_s14  ;;  %s1101_s22 = scalar_lea.vmem (%p1051_p4), %s1142_s7, %s764_s20  }
  0x16   : > { %v301_v2 = vld [vmem:[%s289_s17] sm:$0xff]  ;;  %v302_v3 = vld [vmem:[%s289_s17 + $0x8] sm:$0xff]  ;;  %s733_s17 = sshll.u32 %s278_s16, 4 }
  0x17   : > { %v303_v4 = vpack.c.bf16 %v302_v3, %v301_v2  ;;  %s1090_s18 = scalar_lea.vmem [#allocation2], %s733_s17  }
  0x19   : > { %778 = vmatmul.mubr.msk.bf16.vlgmr.msra.gmra.mrb[0].mxu0 %vm319_vm1, %v303_v4 }
  0x1a   : > { %793 = vmatprep.mubr.msk.bf16.mxu0 %vm985_vm0, %v984_v1  ;;  %790 = vmatpush3.bf16.msra.mxu0 %v890_v17 }
  0x1b   : > { %791 = vmatprep.subr.bf16.mxu0 %v984_v1 }
  0x1e   : > { %792 = vmatpush3.bf16.msra.mxu0 %v891_v18 }
  0xec   : > { %v357_v8 = vpop.f32.mrb[0].mxu0 }
  0xed   : > { %v358_v9 = vadd.f32 %v736_v7, %v357_v8  ;;  %v779_v10 = vpop.f32.mrb[1].mxu0 }
  0xee   : > { %v360_v11 = vpop.f32.mrb[2].mxu0 }
  0xef   : > { %v361_v12 = vadd.f32 %v736_v7, %v360_v11  ;;  %v780_v13 = vpop.f32.mrb[3].mxu0  ;;  %v364_v14 = vmax.f32 %v358_v9, 0.0 }
  0xf1   : > { %v365_v15 = vmax.f32 %v361_v12, 0.0 }
  0xf3   : > { %v366_v16 = vpack.c.bf16 %v365_v15, %v364_v14 }
  0xf5   : > { %786 = vmatmul.mubr.msk.bf16.vlgmr.msra.gmra.mrb[0].mxu1 %vm390_vm2, %v366_v16 }
 0x1c8   : > { %v428_v20 = vpop.f32.mrb[0].mxu1 }
 0x1c9   : > { %v429_v21 = vadd.f32 %v739_v19, %v428_v20  ;;  %v787_v22 = vpop.f32.mrb[1].mxu1 }
 0x1ca   : > { %v431_v23 = vpop.f32.mrb[2].mxu1 }
 0x1cb   : > { %v432_v24 = vadd.f32 %v739_v19, %v431_v23  ;;  %v788_v25 = vpop.f32.mrb[3].mxu1  ;;  %v435_v26 = vmax.f32 %v429_v21, 0.0 }
 0x1cd   : > { %v436_v27 = vmax.f32 %v432_v24, 0.0 }
 0x1cf   : > { %v437_v28 = vpack.c.bf16 %v436_v27, %v435_v26 }
 0x1d1   : > { %794 = vmatmul.mubr.msk.bf16.vlgmr.msra.gmra.mrb[4].mxu0 %vm390_vm2, %v437_v28 }
 0x2a4   : > { %v498_v30 = vpop.f32.mrb[4].mxu0 }
 0x2a5   : > { %v499_v31 = vadd.f32 %v743_v29, %v498_v30  ;;  %v795_v32 = vpop.f32.mrb[5].mxu0 }
 0x2a6   : > { %v501_v33 = vpop.f32.mrb[6].mxu0 }
 0x2a7   : > { %892 = vtanh.f32 %v499_v31  ;;  %v502_v34 = vadd.f32 %v743_v29, %v501_v33  ;;  %v796_v35 = vpop.f32.mrb[7].mxu0 }
 0x2a9   : > { %894 = vtanh.f32 %v502_v34 }
 0x2ae   : > { %516 = sbr.rel (!%p1051_p4) target bundleno = 742 (0x2e6), region = 52 }
 0x2b1   : > { %v893_v36 = vpop.eup %892 }
 0x2b2   : > { %508 = vst.msk [vmem:[%s1090_s18] sm:$0xff] %vm507_vm3, %v893_v36 }
 0x2b3   : > { %v895_v37 = vpop.eup %894 }
 0x2b4   : > { %509 = vst.msk [vmem:[%s1090_s18 + $0x8] sm:$0xff] %vm507_vm3, %v895_v37 }
 0x2b5   : > { %s1148_s19 = smov (!%p519_p8, %s518_s19), 2 }
 0x2b6   : > { %s749_s23 = sshll.u32 %s1148_s19, 7 }
 0x2b7   : > { %p752_p9 = scmp.eq.s32.totalorder %s749_s23, 0 }
 0x2b8   : > { %s1107_s26 = sshrl.u32 (!%p752_p9), %s1148_s19, 1 }
 0x2b9   : > { %527 = sbr.rel (%p752_p9) target bundleno = 742 (0x2e6), region = 56  ;;  %p753_p10 = scmp.le.s32.totalorder (!%p752_p9), %s1107_s26, 0 }
 0x2c0   : > { %685 = sbr.rel (%p753_p10) target bundleno = 721 (0x2d1), region = 132  ;;  %s952_s27 = smov (!%p753_p10), %s1101_s22  }
 0x2c1   : > { %s956_s9 = smov (!%p753_p10), %s1090_s18   ;;  %s960_s12 = smov (!%p753_p10), 0  }
 0x2c2   : > { %s964_s29 = smov (!%p753_p10), 0  }
 0x2c7 LB: >> { %v591_v38 = vld [vmem:[%s958_s9] sm:$0xff]  ;;  %v593_v39 = vld [vmem:[%s958_s9 + $0x8] sm:$0xff]  ;;  %s595_s30 = sadd.s32 1, %s962_s12  ;;  %s585_s29 = sadd.s32 1, %s966_s29   ;;  %s966_s29 = sphi %s964_s29, %s585_s29   ;;  %s962_s12 = sphi %s960_s12, %s961_s12   ;;  %s958_s9 = sphi %s956_s9, %s600_s9   ;;  %s954_s27 = sphi %s952_s27, %s601_s27  }
 0x2c8   : >> { %592 = vst [vmem:[%s954_s27] sm:$0xff] %v591_v38  ;;  %594 = vst [vmem:[%s954_s27 + $0x8] sm:$0xff] %v593_v39  ;;  %p596_p11 = scmp.ge.s32.totalorder %s595_s30, %s1107_s26  ;;  %p584_p12 = scmp.ge.s32.totalorder %s585_s29, %s1107_s26 }
 0x2ca   : >> { %s1150_s30 = smov (%p596_p11, %s595_s30), 0  ;;  %587 = sbr.rel (!%p584_p12) target bundleno = 711 (0x2c7), region = 138 }
 0x2cb   : >> { %s754_s10 = sshll.u32 %s1150_s30, 4  ;;  %s961_s12 = smov %s1150_s30  }
 0x2cc   : >> { %s600_s9 = scalar_lea.vmem %s1090_s18, %s754_s10 [#allocation2]   ;;  %s601_s27 = scalar_lea.vmem %s1101_s22, %s754_s10  }
 0x2d1 PF: > { %s1117_s11 = sand.u32 1, %s1148_s19   ;;  %s765_s13 = sshll.u32 %s1107_s26, 4 }
 0x2d2   : > { %s606_s14 = scalar_lea.vmem %s1090_s18, %s765_s13 [#allocation2]   ;;  %s608_s15 = scalar_lea.vmem %s1101_s22, %s765_s13  }
 0x2d3   : > { %p759_p13 = scmp.le.s32.totalorder %s1117_s11, 0 }
 0x2d4   : > { %s968_s16 = smov (!%p759_p13), %s608_s15   ;;  %s972_s17 = smov (!%p759_p13), %s606_s14  }
 0x2d5   : > { %699 = sbr.rel (%p759_p13) target bundleno = 742 (0x2e6), region = 143  ;;  %s976_s20 = smov (!%p759_p13), 0  }
 0x2d6   : > { %s980_s24 = smov (!%p759_p13), 0  }
 0x2dc LB: >> { %v618_v40 = vld [vmem:[%s974_s17] sm:$0xff]  ;;  %s620_s19 = sadd.s32 1, %s978_s20  ;;  %s612_s24 = sadd.s32 1, %s982_s24   ;;  %s982_s24 = sphi %s980_s24, %s612_s24   ;;  %s978_s20 = sphi %s976_s20, %s977_s20   ;;  %s974_s17 = sphi %s972_s17, %s625_s17   ;;  %s970_s16 = sphi %s968_s16, %s626_s16  }
 0x2dd   : >> { %619 = vst [vmem:[%s970_s16] sm:$0xff] %v618_v40  ;;  %p621_p0 = scmp.ge.s32.totalorder %s620_s19, %s1117_s11  ;;  %p611_p1 = scmp.ge.s32.totalorder %s612_s24, %s1117_s11 }
 0x2df   : >> { %s1152_s19 = smov (%p621_p0, %s620_s19), 0  ;;  %614 = sbr.rel (!%p611_p1) target bundleno = 732 (0x2dc), region = 149 }
 0x2e0   : >> { %s760_s18 = sshll.u32 %s1152_s19, 3  ;;  %s977_s20 = smov %s1152_s19  }
 0x2e1   : >> { %s625_s17 = scalar_lea.vmem %s606_s14, %s760_s18 [#allocation2]   ;;  %s626_s16 = scalar_lea.vmem %s608_s15, %s760_s18  }
 0x2e6 PF: > { %p14_p2 = scmp.ge.s32.totalorder %s1041_s28, 5   ;;  %s1144_s24 = smov %s946_s25 }
 0x2e7   : > { %s1145_s25 = smov %s1049_s8  ;;  %s1146_s26 = smov %s1041_s28 }
 0x2e8   :  { %16 = sbr.rel (!%p14_p2) target bundleno = 2 (0x2), region = 160 }

</bundles_post_ra>
